<compile_context>
chip_gen: v7x
topology: tpu7x:2x2x1
jax: 0.10.0
libtpu: 0.0.40
codegen_flags: <defaults>
</compile_context>

<pallas_src>
import jax
import jax.numpy as jnp
from jax.experimental import pallas as pl
from jax.experimental.pallas import tpu as pltpu


def _round_up(n, m):
    return ((n + m - 1) // m) * m


def _choose_batch_tile(B, block_m):
    """Batch tile for the fused-MLP pass.

    Small batches: one tile (per-step overhead dominates).  Larger batches:
    guarantee >=2 grid steps so the "parallel" axis shards across v7x's two
    TensorCores, with tiles kept at multiples of 128 for MXU occupancy.
    """
    if B <= 256:
        return min(_round_up(block_m, 8), _round_up(B, 8))
    return min(_round_up(block_m, 8), _round_up(pl.cdiv(B, 2), 128))


def prepare_weights(w1t, w2t):
    """Cast the matmul weights to bf16 ONCE (hoisted out of the forward path)."""
    return w1t.astype(jnp.bfloat16), w2t.astype(jnp.bfloat16)


def linear_mapping_forward(x, gamma, beta, w1t, b1, w2t, b2, *,
                           block_m=512, stats_block_m=1024, eps=1e-5,
                           out_dtype=jnp.float32):
    """x: (B, 2D) f32. Weights pre-transposed: w1t (2D, D), w2t (D, D), ideally
    already bf16 (see prepare_weights). Returns (B, D) in out_dtype."""
    B, twoD = x.shape
    D = twoD // 2

    # Only cast if the caller didn't pre-cast (static dtype check; no per-call
    # weight-copy pass when params are already bf16).
    if w1t.dtype != jnp.bfloat16:
        w1t = w1t.astype(jnp.bfloat16)
    if w2t.dtype != jnp.bfloat16:
        w2t = w2t.astype(jnp.bfloat16)

    # ------------------ Pass 1: BatchNorm batch statistics ------------------
    tm1 = max(8, _round_up(min(stats_block_m, B), 8))
    nt1 = pl.cdiv(B, tm1)          # number of batch tiles
    ns = 2 if nt1 >= 2 else 1      # splits (one per TensorCore on v7x)
    tps = pl.cdiv(nt1, ns)         # tiles per split

    def bn_stats_kernel(x_ref, sum_ref, sq_ref):
        @pl.when(pl.program_id(1) == 0)
        def _():
            sum_ref[...] = jnp.zeros_like(sum_ref)
            sq_ref[...] = jnp.zeros_like(sq_ref)

        # Logical tile index.  Rows >= B (partial last tile, or a fully
        # out-of-range tile when nt1 is odd) contribute zero, so the stats are
        # exact without host-side padding.
        tile = pl.program_id(0) * tps + pl.program_id(1)
        rows = tile * tm1 + jax.lax.broadcasted_iota(jnp.int32, x_ref.shape, 0)
        x_blk = jnp.where(rows < B, x_ref[...].astype(jnp.float32), 0.0)
        sum_ref[...] += jnp.sum(x_blk, axis=0, keepdims=True)[None]
        sq_ref[...] += jnp.sum(x_blk * x_blk, axis=0, keepdims=True)[None]

    def stats_x_map(c, i):
        # Clamp so a fully out-of-range logical tile still reads valid memory
        # (its contribution is zeroed by the row mask in the kernel).
        return (jnp.minimum(c * tps + i, nt1 - 1), 0)

    part_sum, part_sq = pl.pallas_call(
        bn_stats_kernel,
        out_shape=(jax.ShapeDtypeStruct((ns, 1, twoD), jnp.float32),
                   jax.ShapeDtypeStruct((ns, 1, twoD), jnp.float32)),
        grid=(ns, tps),
        in_specs=[pl.BlockSpec((tm1, twoD), stats_x_map)],
        out_specs=(pl.BlockSpec((1, 1, twoD), lambda c, i: (c, 0, 0)),
                   pl.BlockSpec((1, 1, twoD), lambda c, i: (c, 0, 0))),
        compiler_params=pltpu.CompilerParams(
            dimension_semantics=("parallel", "arbitrary")),
    )(x)

    sums = jnp.sum(part_sum, axis=0)            # (1, 2D)
    sqs = jnp.sum(part_sq, axis=0)              # (1, 2D)
    mean = sums / B
    # TODO(synk): E[x^2]-E[x]^2 loses precision for badly-centered inputs;
    # switch to a shifted / Welford-style accumulation if that regime matters.
    var = jnp.maximum(sqs / B - mean * mean, 0.0)   # biased var (PyTorch BN)
    inv = jax.lax.rsqrt(var + eps)
    scale = gamma * inv                          # (1, 2D)
    shift = beta - mean * scale                  # (1, 2D)

    # ------------- Pass 2: fused BN-affine + ReLU + Linear x2 -------------
    tm = _choose_batch_tile(B, block_m)
    grid = (pl.cdiv(B, tm),)

    def linear_mapping_kernel(x_ref, scale_ref, shift_ref, w1_ref, b1_ref,
                              w2_ref, b2_ref, out_ref):
        # BatchNorm folded into a single FMA; elementwise path stays f32
        # (v5e-safe: no bf16 VPU there).
        h = jnp.maximum(x_ref[...] * scale_ref[...] + shift_ref[...], 0.0)
        # Linear(2D -> D) + ReLU: bf16 MXU inputs, f32 accumulation.
        h1 = jnp.dot(h.astype(jnp.bfloat16), w1_ref[...],
                     preferred_element_type=jnp.float32) + b1_ref[...]
        h1 = jnp.maximum(h1, 0.0)
        # Linear(D -> D).
        out = jnp.dot(h1.astype(jnp.bfloat16), w2_ref[...],
                      preferred_element_type=jnp.float32) + b2_ref[...]
        out_ref[...] = out.astype(out_ref.dtype)

    flops = 2 * B * (twoD * D + D * D) + 4 * B * twoD
    bytes_accessed = (B * twoD * 4 + B * D * jnp.dtype(out_dtype).itemsize
                      + (twoD * D + D * D) * 2 + (2 * twoD + 4 * D) * 4)
    # VMEM: double-buffered x/out tiles + (double-buffered) bf16 weights + vecs.
    vmem_bytes = (2 * tm * twoD * 4 + 2 * tm * D * 4
                  + 2 * (twoD * D + D * D) * 2 + (2 * twoD + 4 * D) * 8)
    # Cap below v7x's 64 MiB physical VMEM to leave compiler-scratch headroom.
    vmem_limit = min(48 * 1024 * 1024, max(16 * 1024 * 1024, 2 * vmem_bytes))
    # TODO(synk): for D >~ 3-4k the resident weights (6*D^2 bytes) blow the v7x
    # budget; add a second grid axis tiling the output/N dim of w1/w2 and
    # single-buffer the constant blocks (pl.Buffered(1)) at that point.

    out = pl.pallas_call(
        linear_mapping_kernel,
        out_shape=jax.ShapeDtypeStruct((B, D), out_dtype),
        grid=grid,
        in_specs=[
            pl.BlockSpec((tm, twoD), lambda i: (i, 0)),   # x tile (pipelined)
            pl.BlockSpec((1, twoD), lambda i: (0, 0)),    # BN scale (resident)
            pl.BlockSpec((1, twoD), lambda i: (0, 0)),    # BN shift (resident)
            pl.BlockSpec((twoD, D), lambda i: (0, 0)),    # W1 bf16  (resident)
            pl.BlockSpec((1, D), lambda i: (0, 0)),       # b1       (resident)
            pl.BlockSpec((D, D), lambda i: (0, 0)),       # W2 bf16  (resident)
            pl.BlockSpec((1, D), lambda i: (0, 0)),       # b2       (resident)
        ],
        out_specs=pl.BlockSpec((tm, D), lambda i: (i, 0)),
        compiler_params=pltpu.CompilerParams(
            dimension_semantics=("parallel",),            # shards TCs on v7x
            vmem_limit_bytes=vmem_limit),
        cost_estimate=pl.CostEstimate(flops=flops, transcendentals=0,
                                      bytes_accessed=bytes_accessed),
    )(x, scale, shift, w1t, b1, w2t, b2)

    return out


# ---------------------------------------------------------------------------
# Params / reference
# ---------------------------------------------------------------------------
def init_params(key, image_embed_dim):
    D = image_embed_dim
    k1, k2, k3, k4 = jax.random.split(key, 4)
    # BatchNorm1d(2D): gamma=1, beta=0 (PyTorch defaults)
    gamma = jnp.ones((1, 2 * D), jnp.float32)
    beta = jnp.zeros((1, 2 * D), jnp.float32)
    # Linear(2D -> D): PyTorch-style uniform(-1/sqrt(fan_in), 1/sqrt(fan_in))
    lim1 = 1.0 / jnp.sqrt(2.0 * D)
    w1t = jax.random.uniform(k1, (2 * D, D), jnp.float32, -lim1, lim1)  # (in, out)
    b1 = jax.random.uniform(k2, (1, D), jnp.float32, -lim1, lim1)
    # Linear(D -> D)
    lim2 = 1.0 / jnp.sqrt(1.0 * D)
    w2t = jax.random.uniform(k3, (D, D), jnp.float32, -lim2, lim2)      # (in, out)
    b2 = jax.random.uniform(k4, (1, D), jnp.float32, -lim2, lim2)
    return gamma, beta, w1t, b1, w2t, b2


def reference_forward(x, gamma, beta, w1t, b1, w2t, b2):
    mean = jnp.mean(x, axis=0, keepdims=True)
    var = jnp.mean((x - mean) ** 2, axis=0, keepdims=True)
    h = (x - mean) / jnp.sqrt(var + 1e-5) * gamma + beta
    h = jnp.maximum(h, 0.0)
    h1 = jnp.maximum(h @ w1t + b1, 0.0)
    return h1 @ w2t + b2


if __name__ == "__main__":
    image_embed_dim = 32          # small synthetic size (module default is 512)
    key = jax.random.PRNGKey(0)
    kx1, kx2, kx3, kp = jax.random.split(key, 4)
    gamma, beta, w1t, b1, w2t, b2 = init_params(kp, image_embed_dim)
    w1_bf, w2_bf = prepare_weights(w1t, w2t)   # bf16 cast hoisted out of forward

    # Case 1: single-tile path. Module's forward takes x[0]; mirror the interface.
    B1 = 8
    x_list = [jax.random.normal(kx1, (B1, 2 * image_embed_dim), jnp.float32)]
    out1 = jax.block_until_ready(
        linear_mapping_forward(x_list[0], gamma, beta, w1_bf, b1, w2_bf, b2))
    ref1 = reference_forward(x_list[0], gamma, beta, w1t, b1, w2t, b2)
    assert out1.shape == (B1, image_embed_dim)
    # bf16 MXU inputs (f32 accumulation) => compare to f32 reference at bf16 tol.
    assert jnp.allclose(out1, ref1, atol=3e-2, rtol=3e-2)

    # Case 2: multi-tile grid with a partial last tile (B=20, tm=8) and a
    # 2-way-split stats grid with one fully out-of-range logical tile. No padding.
    B2 = 20
    x2 = jax.random.normal(kx2, (B2, 2 * image_embed_dim), jnp.float32)
    out2 = jax.block_until_ready(
        linear_mapping_forward(x2, gamma, beta, w1_bf, b1, w2_bf, b2,
                               block_m=8, stats_block_m=8))
    ref2 = reference_forward(x2, gamma, beta, w1t, b1, w2t, b2)
    assert out2.shape == (B2, image_embed_dim)
    assert jnp.allclose(out2, ref2, atol=3e-2, rtol=3e-2)

    # Case 3: larger batch -> pass 2 gets >=2 "parallel" steps (tm=256, last
    # tile partially valid) and pass 1 runs the (2, 2) split stats grid.
    B3 = 300
    x3 = jax.random.normal(kx3, (B3, 2 * image_embed_dim), jnp.float32)
    out3 = jax.block_until_ready(
        linear_mapping_forward(x3, gamma, beta, w1_bf, b1, w2_bf, b2,
                               stats_block_m=128))
    ref3 = reference_forward(x3, gamma, beta, w1t, b1, w2t, b2)
    assert out3.shape == (B3, image_embed_dim)
    assert jnp.allclose(out3, ref3, atol=3e-2, rtol=3e-2)

    print("KERNEL_OK")
</pallas_src>

<mosaic_0001>
module attributes {stable_mosaic.version = 11 : i64} {
  func.func @bn_stats_kernel(%arg0: i32, %arg1: i32, %arg2: memref<8x64xf32, #tpu.memory_space<vmem>>, %arg3: memref<1x1x64xf32, #tpu.memory_space<vmem>>, %arg4: memref<1x1x64xf32, #tpu.memory_space<vmem>>) attributes {dimension_semantics = [#tpu.dimension_semantics<parallel>, #tpu.dimension_semantics<arbitrary>], iteration_bounds = array<i64: 1, 1>, scalar_prefetch = 0 : i64, scratch_operands = 0 : i64, tpu.core_type = #tpu.core_type<tc>, window_params = [{transform_indices = @transform_0, window_bounds = array<i64: 8, 64>}, {transform_indices = @transform_1, window_bounds = array<i64: 1, 1, 64>}, {transform_indices = @transform_2, window_bounds = array<i64: 1, 1, 64>}]} {
    %c0_i32 = arith.constant 0 : i32
    %0 = arith.cmpi eq, %arg1, %c0_i32 : i32
    %1 = arith.extui %0 : i1 to i32
    %c0_i32_0 = arith.constant 0 : i32
    %2 = arith.cmpi ne, %1, %c0_i32_0 : i32
    scf.if %2 {
      %cst_17 = arith.constant 0.000000e+00 : f32
      %27 = vector.broadcast %cst_17 : f32 to vector<1x1x64xf32>
      %c0_18 = arith.constant 0 : index
      %c0_19 = arith.constant 0 : index
      %c0_20 = arith.constant 0 : index
      %28 = vector.load %arg3[%c0_18, %c0_19, %c0_20] : memref<1x1x64xf32, #tpu.memory_space<vmem>>, vector<1x1x64xf32>
      tpu.vector_store %arg3[%c0_18, %c0_19, %c0_20], %27 {strides = array<i32>} : memref<1x1x64xf32, #tpu.memory_space<vmem>>, vector<1x1x64xf32>,
      %cst_21 = arith.constant 0.000000e+00 : f32
      %29 = vector.broadcast %cst_21 : f32 to vector<1x1x64xf32>
      %c0_22 = arith.constant 0 : index
      %c0_23 = arith.constant 0 : index
      %c0_24 = arith.constant 0 : index
      %30 = vector.load %arg4[%c0_22, %c0_23, %c0_24] : memref<1x1x64xf32, #tpu.memory_space<vmem>>, vector<1x1x64xf32>
      tpu.vector_store %arg4[%c0_22, %c0_23, %c0_24], %29 {strides = array<i32>} : memref<1x1x64xf32, #tpu.memory_space<vmem>>, vector<1x1x64xf32>,
    } else {
    }
    %c1_i32 = arith.constant 1 : i32
    %3 = arith.muli %arg0, %c1_i32 : i32
    %4 = arith.addi %3, %arg1 : i32
    %c8_i32 = arith.constant 8 : i32
    %5 = arith.muli %4, %c8_i32 : i32
    %6 = tpu.iota {dimensions = array<i32: 0>} : vector<8x64xi32>
    %7 = vector.broadcast %5 : i32 to vector<8x64xi32>
    %8 = arith.addi %7, %6 : vector<8x64xi32>
    %c8_i32_1 = arith.constant 8 : i32
    %9 = vector.broadcast %c8_i32_1 : i32 to vector<8x64xi32>
    %10 = arith.cmpi slt, %8, %9 : vector<8x64xi32>
    %c0 = arith.constant 0 : index
    %c0_2 = arith.constant 0 : index
    %11 = vector.load %arg2[%c0, %c0_2] : memref<8x64xf32, #tpu.memory_space<vmem>>, vector<8x64xf32>
    %cst = arith.constant 0.000000e+00 : f32
    %12 = vector.broadcast %cst : f32 to vector<8x64xf32>
    %13 = arith.select %10, %11, %12 : vector<8x64xi1>, vector<8x64xf32>
    %c0_3 = arith.constant 0 : index
    %c0_4 = arith.constant 0 : index
    %c0_5 = arith.constant 0 : index
    %14 = vector.load %arg3[%c0_3, %c0_4, %c0_5] : memref<1x1x64xf32, #tpu.memory_space<vmem>>, vector<1x1x64xf32>
    %cst_6 = arith.constant dense<0.000000e+00> : vector<64xf32>
    %15 = vector.multi_reduction <add>, %13, %cst_6 [0] : vector<8x64xf32> to vector<64xf32>
    %16 = vector.shape_cast %15 : vector<64xf32> to vector<1x64xf32>
    %17 = vector.shape_cast %16 : vector<1x64xf32> to vector<1x1x64xf32>
    %18 = arith.addf %14, %17 : vector<1x1x64xf32>
    %c0_7 = arith.constant 0 : index
    %c0_8 = arith.constant 0 : index
    %c0_9 = arith.constant 0 : index
    %19 = vector.load %arg3[%c0_7, %c0_8, %c0_9] : memref<1x1x64xf32, #tpu.memory_space<vmem>>, vector<1x1x64xf32>
    tpu.vector_store %arg3[%c0_7, %c0_8, %c0_9], %18 {strides = array<i32>} : memref<1x1x64xf32, #tpu.memory_space<vmem>>, vector<1x1x64xf32>,
    %c0_10 = arith.constant 0 : index
    %c0_11 = arith.constant 0 : index
    %c0_12 = arith.constant 0 : index
    %20 = vector.load %arg4[%c0_10, %c0_11, %c0_12] : memref<1x1x64xf32, #tpu.memory_space<vmem>>, vector<1x1x64xf32>
    %21 = arith.mulf %13, %13 : vector<8x64xf32>
    %cst_13 = arith.constant dense<0.000000e+00> : vector<64xf32>
    %22 = vector.multi_reduction <add>, %21, %cst_13 [0] : vector<8x64xf32> to vector<64xf32>
    %23 = vector.shape_cast %22 : vector<64xf32> to vector<1x64xf32>
    %24 = vector.shape_cast %23 : vector<1x64xf32> to vector<1x1x64xf32>
    %25 = arith.addf %20, %24 : vector<1x1x64xf32>
    %c0_14 = arith.constant 0 : index
    %c0_15 = arith.constant 0 : index
    %c0_16 = arith.constant 0 : index
    %26 = vector.load %arg4[%c0_14, %c0_15, %c0_16] : memref<1x1x64xf32, #tpu.memory_space<vmem>>, vector<1x1x64xf32>
    tpu.vector_store %arg4[%c0_14, %c0_15, %c0_16], %25 {strides = array<i32>} : memref<1x1x64xf32, #tpu.memory_space<vmem>>, vector<1x1x64xf32>,
    return
  }
  func.func @transform_0(%arg0: i32, %arg1: i32) -> (i32, i32) {
    %c1_i32 = arith.constant 1 : i32
    %0 = arith.muli %arg0, %c1_i32 : i32
    %1 = arith.addi %0, %arg1 : i32
    %c0_i32 = arith.constant 0 : i32
    %2 = arith.minsi %1, %c0_i32 : i32
    %c0_i32_0 = arith.constant 0 : i32
    %c0_i32_1 = arith.constant 0 : i32
    return %2, %c0_i32_0 : i32, i32
  }
  func.func @transform_1(%arg0: i32, %arg1: i32) -> (i32, i32, i32) {
    %c0_i32 = arith.constant 0 : i32
    %c0_i32_0 = arith.constant 0 : i32
    %c0_i32_1 = arith.constant 0 : i32
    return %arg0, %c0_i32, %c0_i32_0 : i32, i32, i32
  }
  func.func @transform_2(%arg0: i32, %arg1: i32) -> (i32, i32, i32) {
    %c0_i32 = arith.constant 0 : i32
    %c0_i32_0 = arith.constant 0 : i32
    %c0_i32_1 = arith.constant 0 : i32
    return %arg0, %c0_i32, %c0_i32_0 : i32, i32, i32
  }
}

</mosaic_0001>

<bundles_post_ra>
// kernel: tpu_custom_call.1
= control target key start
LH: loop header
LB: loop body
LE: loop exit
PB: predicated region body
PF: predicated region fallthrough
CT: control target
= control target key end

     0   :  { %8 = vsyncpa [#allocation3], 0  ;;  %s245_s0 = inlined_call_operand.hbm [shape: f32[8,64], index: 0, kind: input, shape index: {}]   ;;  %s246_s1 = inlined_call_operand.hbm [shape: f32[1,1,64], index: 1, kind: output, shape index: {0}]   ;;  %s247_s2 = inlined_call_operand.hbm [shape: f32[1,1,64], index: 2, kind: output, shape index: {1}]  }
   0x1   :  { %9 = vsyncpa [#allocation4], 0 }
   0x2   :  { %10 = vsyncpa [#allocation7], 0  ;;  %s178_s9 = smov [#allocation2]   ;;  %s106_s13 = scalar_lea.hbm %s245_s0, 128 }
   0x3   :  { %s22_s10 = sshll.u32 %s178_s9, 4  ;;  %p107_p0 = scmp.ne.s32.totalorder %s245_s0, %s106_s13  ;;  %s23_s10 = int_to_ptr.vmem [resolvable:$true] %s22_s10 }
   0x4   :  { %p110_p1 = scmp.lt.u32.totalorder %s106_s13, %s245_s0 }
   0x6   :  { %p112_p2 = pnand %p110_p1, %p107_p0 }
   0x8   :  { %115 = shalt.err (!%p112_p2)
}
   0x9   :  { %s116_s18 = scalar_lea.vmem %s23_s10, 128  ;;  %p121_p4 = scmp.lt.s32.totalorder %s23_s10, %s23_s10 }
   0xa   :  { %p117_p3 = scmp.ne.s32.totalorder %s23_s10, %s116_s18  ;;  %p122_p5 = scmp.lt.s32.totalorder %s116_s18, %s116_s18 }
   0xc   :  { %p123_p6 = por %p122_p5, %p121_p4 }
   0xe   :  { %p124_p7 = pnand %p123_p6, %p117_p3 }
  0x10   :  { %127 = shalt.err (!%p124_p7)
}
  0x11   :  { %25 = dma.hbm_to_vmem [thread:$0]  %s245_s0, 128, %s23_s10, [#allocation3]  }
  0x12   :  { %172 = dma.done.wait [#allocation3], 128  }
  0x13   :  { %173 = vsyncadd [#allocation3], 4294967168  ;;  %vm36_vm0 = vcmask 516096   ;;  %v179_v0 = vmov 0.0   ;;  %vm49_vm1 = vcmask 523264   ;;  %v46_v1 = vld [vmem:[#allocation2] sm:$0xff] }
  0x14   :  { %37 = vst.msk [vmem:[#allocation5] sm:$0x1] %vm36_vm0, %v179_v0  ;;  %38 = vst.msk [vmem:[#allocation6] sm:$0x1] %vm36_vm0, %v179_v0  ;;  %v50_v2 = vsel %vm49_vm1, %v46_v1, 0.0  ;;  %v61_v3 = vmul.f32 %v46_v1, %v46_v1  ;;  %s180_s0 = smov [#allocation5]  }
  0x15   :  { %v51_v4 = vrot.slane %v50_v2, 4  ;;  %s77_s21 = sshll.u32 %s180_s0, 4  ;;  %s181_s22 = smov [#allocation6]   ;;  %s78_s21 = int_to_ptr.vmem [resolvable:$true] %s77_s21 }
  0x16   :  { %v62_v5 = vsel %vm49_vm1, %v61_v3, 0.0  ;;  %s87_s23 = sshll.u32 %s181_s22, 4  ;;  %s128_s24 = scalar_lea.vmem %s78_s21, 16  ;;  %s212_s23 = int_to_ptr.vmem [resolvable:$true] %s87_s23 }
  0x17   :  { %v52_v6 = vadd.f32 %v51_v4, %v50_v2  ;;  %v63_v7 = vrot.slane %v62_v5, 4  ;;  %p129_p8 = scmp.ne.s32.totalorder %s78_s21, %s128_s24  ;;  %s132_s25 = scalar_lea.vmem %s78_s21, 32 }
  0x18   :  { %p133_p9 = scmp.lt.s32.totalorder %s78_s21, %s78_s21  ;;  %p134_p10 = scmp.lt.s32.totalorder %s132_s25, %s128_s24 }
  0x19   :  { %v53_v8 = vrot.slane %v52_v6, 2  ;;  %v64_v9 = vadd.f32 %v63_v7, %v62_v5 }
  0x1a   :  { %p135_p11 = por %p134_p10, %p133_p9 }
  0x1b   :  { %v54_v10 = vadd.f32 %v53_v8, %v52_v6  ;;  %v65_v11 = vrot.slane %v64_v9, 2  ;;  %v48_v14 = vld [vmem:[#allocation5] sm:$0x1]  ;;  %v60_v17 = vld [vmem:[#allocation6] sm:$0x1] }
  0x1c   :  { %p136_p12 = pnand %p135_p11, %p129_p8 }
  0x1d   :  { %v55_v12 = vrot.slane %v54_v10, 1  ;;  %v66_v13 = vadd.f32 %v65_v11, %v64_v9 }
  0x1f   :  { %v56_v15 = vadd.f32 %v55_v12, %v54_v10  ;;  %v67_v16 = vrot.slane %v66_v13, 1 }
  0x21   :  { %v57_v18 = vadd.f32 %v56_v15, %v48_v14  ;;  %v68_v19 = vadd.f32 %v67_v16, %v66_v13 }
  0x23   :  { %59 = vst.msk [vmem:[#allocation5] sm:$0x1] %vm36_vm0, %v57_v18  ;;  %v69_v20 = vadd.f32 %v68_v19, %v60_v17 }
  0x24   :  { %139 = shalt.err (!%p136_p12)
}
  0x25   :  { %s140_s28 = scalar_lea.hbm %s246_s1, 16 }
  0x26   :  { %p141_p13 = scmp.ne.s32.totalorder %s246_s1, %s140_s28  ;;  %p144_p0 = scmp.lt.u32.totalorder %s140_s28, %s246_s1 }
  0x28   :  { %p146_p1 = pnand %p144_p0, %p141_p13 }
  0x2a   :  { %149 = shalt.err (!%p146_p1)
}
  0x2b   :  { %80 = dma.vmem_to_hbm [thread:$0]  %s78_s21, 16, %s246_s1, [#allocation4]   ;;  %70 = vst.msk [vmem:[#allocation6] sm:$0x1] %vm36_vm0, %v69_v20 }
  0x2c   :  { %s150_s7 = scalar_lea.vmem %s212_s23, 16  ;;  %s154_s8 = scalar_lea.vmem %s212_s23, 32 }
  0x2d   :  { %p151_p2 = scmp.ne.s32.totalorder %s212_s23, %s150_s7  ;;  %p155_p3 = scmp.lt.s32.totalorder %s212_s23, %s212_s23 }
  0x2e   :  { %p156_p4 = scmp.lt.s32.totalorder %s154_s8, %s150_s7 }
  0x30   :  { %p157_p5 = por %p156_p4, %p155_p3 }
  0x32   :  { %p158_p6 = pnand %p157_p5, %p151_p2 }
  0x34   :  { %161 = shalt.err (!%p158_p6)
}
  0x35   :  { %s162_s11 = scalar_lea.hbm %s247_s2, 16 }
  0x36   :  { %p163_p7 = scmp.ne.s32.totalorder %s247_s2, %s162_s11  ;;  %p166_p8 = scmp.lt.u32.totalorder %s162_s11, %s247_s2 }
  0x38   :  { %p168_p9 = pnand %p166_p8, %p163_p7 }
  0x3a   :  { %171 = shalt.err (!%p168_p9)
}
  0x3b   :  { %90 = dma.vmem_to_hbm [thread:$0]  %s212_s23, 16, %s247_s2, [#allocation7]  }
  0x3c   :  { %174 = dma.done.wait [#allocation4], 16  }
  0x3d   :  { %175 = vsyncadd [#allocation4], 4294967280 }
  0x3e   :  { %176 = dma.done.wait [#allocation7], 16  }
  0x3f   :  { %177 = vsyncadd [#allocation7], 4294967280 }
  0x40   :  { %97 = vsyncpa [#allocation3], 1 }
  0x41   :  { %98 = vsyncpa [#allocation4], 1 }
  0x42   :  { %99 = vsyncpa [#allocation7], 1 }

</bundles_post_ra>
